<compile_context>
chip_gen: v6e
topology: v6e:2x2x1
jax: 0.10.0
libtpu: 0.0.40
codegen_flags: <defaults>
</compile_context>

<pallas_src>
import functools

import numpy as np
import jax
import jax.numpy as jnp
from jax import lax
from jax.experimental import pallas as pl
from jax.experimental.pallas import tpu as pltpu


# ---------------------------------------------------------------------------
# Pallas kernel: fused 3x3-conv (im2col matmul) + folded-BN bias + ReLU
#                + bilinear upsample (second matmul epilogue)
# ---------------------------------------------------------------------------
def _fused_conv_bn_relu_resize_kernel(w_ref, x_ref, b_ref, r_ref, o_ref):
    # w_ref: (Cout, Kp)      bf16 folded conv weight (BN scale folded in)
    # x_ref: (Kp, S)         bf16 im2col of this batch item's pooled pixels
    # b_ref: (Cout, 1)       f32 folded BN bias
    # r_ref: (S, HW_TILE)    f32 combined bilinear-resize matrix tile
    # o_ref: (Cout, HW_TILE) f32 lane-dense upsampled output tile
    z = jnp.dot(w_ref[...], x_ref[...], preferred_element_type=jnp.float32)
    z = jnp.maximum(z + b_ref[...], 0.0)                     # conv + BN + ReLU
    o_ref[...] = jnp.dot(
        z, r_ref[...], preferred_element_type=jnp.float32).astype(o_ref.dtype)


# ---------------------------------------------------------------------------
# Tiling / budget helpers
# ---------------------------------------------------------------------------
def _vmem_budget_and_limit():
    """Generation-aware VMEM budget for block sizing + scoped-VMEM limit."""
    cap = 64 * 1024 * 1024
    try:
        cap = int(getattr(pltpu.get_tpu_info(), "vmem_capacity_bytes", cap))
    except Exception:
        pass
    if cap >= 96 * 1024 * 1024:                # v5e / v6e: 128 MiB physical VMEM
        return 48 * 1024 * 1024, 64 * 1024 * 1024
    return 20 * 1024 * 1024, 28 * 1024 * 1024  # v7x: 64 MiB physical VMEM


def _pick_hw_tile(hw, s, cout, kp, budget):
    """Widest lane-dense output tile along the upsampled H*W axis.

    Per grid step (double-buffered): w(bf16) + x(bf16) + bias(f32) are fixed;
    each output column costs ~8*(S + Cout) bytes (resize column + out column).
    Prefer a single full-width step; otherwise pad H*W UP to the tile.
    """
    fixed = 2 * (cout * kp * 2 + kp * s * 2 + cout * 4)
    per_col = 2 * 4 * (s + cout)
    cap = max(128, min(32768, ((budget - fixed) // per_col) // 128 * 128))
    hw128 = ((hw + 127) // 128) * 128
    if hw128 <= cap:
        return hw128, hw128                    # one full-width step per batch item
    hwp = ((hw + cap - 1) // cap) * cap        # padded columns are zero, sliced off
    return cap, hwp


# ---------------------------------------------------------------------------
# Host-side matrices (exact PyTorch index rules)
# ---------------------------------------------------------------------------
def _adaptive_pool_matrix(in_size, out_size):
    mat = np.zeros((out_size, in_size), dtype=np.float32)
    for i in range(out_size):
        start = (i * in_size) // out_size
        end = ((i + 1) * in_size + out_size - 1) // out_size
        mat[i, start:end] = 1.0 / (end - start)
    return jnp.asarray(mat)


def _bilinear_matrix(in_size, out_size):
    """PyTorch F.interpolate(mode='bilinear', align_corners=False) 1-D weights."""
    mat = np.zeros((out_size, in_size), dtype=np.float32)
    if in_size == 1:
        mat[:, 0] = 1.0
        return mat
    scale = in_size / out_size
    for i in range(out_size):
        src = max((i + 0.5) * scale - 0.5, 0.0)
        i0 = min(int(np.floor(src)), in_size - 1)
        i1 = min(i0 + 1, in_size - 1)
        lam = src - i0
        mat[i, i0] += 1.0 - lam
        mat[i, i1] += lam
    return mat


def adaptive_avg_pool2d(x, out_hw):
    _, _, H, W = x.shape
    ph = _adaptive_pool_matrix(H, out_hw[0])                  # (sh, H)
    pw = _adaptive_pool_matrix(W, out_hw[1])                  # (sw, W)
    return jnp.einsum("ph,nchw,qw->ncpq", ph, x, pw)


# ---------------------------------------------------------------------------
# Fused conv3x3 + BN + ReLU + bilinear upsample (Pallas)
# ---------------------------------------------------------------------------
def _conv_bn_relu_upsample_pallas(pooled, w_folded, bias_folded, out_hw):
    """pooled: (N, Cin, sh, sw) f32 -> (N, Cout, H, W) f32."""
    N, Cin, sh, sw = pooled.shape
    Cout, K = w_folded.shape
    S = sh * sw
    H, W = out_hw
    HW = H * W

    # im2col at the small pooled resolution; (ci, ky, kx) ordering matches
    # torch weight.reshape(Cout, -1).
    xp = jnp.pad(pooled, ((0, 0), (0, 0), (1, 1), (1, 1)))
    taps = [xp[:, :, dy:dy + sh, dx:dx + sw]
            for dy in range(3) for dx in range(3)]
    x_col = jnp.stack(taps, axis=2).reshape(N, K, S)          # (N, K, S)

    # Pad K (= Cin*9) to a multiple of 16 for clean bf16 (16,128) packing;
    # zero rows contribute nothing to the matmul.
    Kp = ((K + 15) // 16) * 16
    if Kp != K:
        x_col = jnp.pad(x_col, ((0, 0), (0, Kp - K), (0, 0)))
        w_folded = jnp.pad(w_folded, ((0, 0), (0, Kp - K)))

    # bf16 inputs for the dominant DMA + native MXU path; f32 accumulation.
    x_bf16 = x_col.astype(jnp.bfloat16)
    w_bf16 = w_folded.astype(jnp.bfloat16)

    # Combined bilinear-resize matrix (PyTorch align_corners=False rule):
    #   out[y*W + x] = sum_{p,q} Rh[y,p] * Rw[x,q] * relu_conv[p*sw + q]
    rh = _bilinear_matrix(sh, H)                              # (H, sh)
    rw = _bilinear_matrix(sw, W)                              # (W, sw)
    r_np = np.einsum("yp,xq->pqyx", rh, rw).reshape(S, HW)

    budget, vmem_limit = _vmem_budget_and_limit()
    hw_tile, HWp = _pick_hw_tile(HW, S, Cout, Kp, budget)
    if HWp != HW:
        r_np = np.pad(r_np, ((0, 0), (0, HWp - HW)))          # zero cols -> zero out
    r_mat = jnp.asarray(r_np, dtype=jnp.float32)

    cost = pl.CostEstimate(
        flops=2 * N * Cout * (Kp * S + S * HWp),
        transcendentals=0,
        bytes_accessed=(2 * (N * Kp * S + Cout * Kp)
                        + 4 * (S * HWp + Cout + N * Cout * HWp)),
    )

    out = pl.pallas_call(
        _fused_conv_bn_relu_resize_kernel,
        out_shape=jax.ShapeDtypeStruct((N, Cout, HWp), jnp.float32),
        grid_spec=pltpu.PrefetchScalarGridSpec(
            num_scalar_prefetch=0,
            grid=(N, HWp // hw_tile),
            in_specs=[
                pl.BlockSpec((Cout, Kp), lambda n, j: (0, 0)),        # weight (resident)
                pl.BlockSpec((None, Kp, S), lambda n, j: (n, 0, 0)),  # per-batch im2col
                pl.BlockSpec((Cout, 1), lambda n, j: (0, 0)),         # folded bias
                pl.BlockSpec((S, hw_tile), lambda n, j: (0, j)),      # resize tile
            ],
            out_specs=pl.BlockSpec((None, Cout, hw_tile), lambda n, j: (n, 0, j)),
        ),
        compiler_params=pltpu.CompilerParams(
            dimension_semantics=("parallel", "parallel"),
            vmem_limit_bytes=vmem_limit,
        ),
        cost_estimate=cost,
    )(w_bf16, x_bf16, bias_folded, r_mat)

    if HWp != HW:
        out = out[:, :, :HW]
    return out.reshape(N, Cout, H, W)


# ---------------------------------------------------------------------------
# AdaptiveAvgPool forward
# ---------------------------------------------------------------------------
def adaptive_avg_pool_forward(x, params, spatial_size):
    """x: (N, Cin, H, W) -> (N, Cout, H, W)."""
    N, Cin, H, W = x.shape
    conv_w = params["conv_w"]                                 # (Cout, Cin, 3, 3)
    Cout = conv_w.shape[0]

    # Fold BatchNorm (inference) into the conv weight / bias on the host:
    #   y = conv(x) * scale + shift,  scale = gamma / sqrt(var + eps)
    scale = params["gamma"] / jnp.sqrt(params["var"] + params["eps"])
    w_folded = (conv_w * scale[:, None, None, None]).reshape(Cout, Cin * 9)
    bias_folded = (params["beta"] - params["mean"] * scale).reshape(Cout, 1)

    pooled = adaptive_avg_pool2d(x, spatial_size)             # plain-JAX glue
    return _conv_bn_relu_upsample_pallas(pooled, w_folded, bias_folded, (H, W))


# ---------------------------------------------------------------------------
# Pure-JAX reference (no Pallas) for correctness checking.
# Note: jax.image.resize('bilinear') matches PyTorch align_corners=False only
# on the upsampling path, which is the path this module exercises; the Pallas
# path uses the exact PyTorch half-pixel rule in all cases.
# ---------------------------------------------------------------------------
def reference_forward(x, params, spatial_size):
    N, _, H, W = x.shape
    pooled = adaptive_avg_pool2d(x, spatial_size)
    y = lax.conv_general_dilated(
        pooled, params["conv_w"], window_strides=(1, 1),
        padding=((1, 1), (1, 1)),
        dimension_numbers=("NCHW", "OIHW", "NCHW"))
    scale = params["gamma"] / jnp.sqrt(params["var"] + params["eps"])
    shift = params["beta"] - params["mean"] * scale
    y = y * scale[None, :, None, None] + shift[None, :, None, None]
    y = jnp.maximum(y, 0.0)
    return jax.image.resize(y, (N, y.shape[1], H, W), method="bilinear")


# ---------------------------------------------------------------------------
# Deterministic parameter construction (mirrors the module __init__ shapes)
# ---------------------------------------------------------------------------
def make_params(in_channel_size, key, affine=True):
    if isinstance(in_channel_size, tuple):
        in_channel, out_channel = in_channel_size
    else:
        in_channel = out_channel = in_channel_size

    conv_w = jax.random.normal(
        key, (out_channel, in_channel, 3, 3), dtype=jnp.float32) * 0.1

    if affine:
        gamma = 1.0 + 0.01 * jnp.arange(out_channel, dtype=jnp.float32)
        beta = 0.02 * jnp.arange(out_channel, dtype=jnp.float32)
    else:
        gamma = jnp.ones((out_channel,), jnp.float32)
        beta = jnp.zeros((out_channel,), jnp.float32)
    mean = 0.05 * jnp.arange(out_channel, dtype=jnp.float32)
    var = 1.0 + 0.1 * jnp.arange(out_channel, dtype=jnp.float32)

    return {"conv_w": conv_w, "gamma": gamma, "beta": beta,
            "mean": mean, "var": var, "eps": 1e-5}


if __name__ == "__main__":
    key = jax.random.PRNGKey(0)
    kx, kw = jax.random.split(key, 2)

    in_channel_size = (4, 8)          # (in_channel, out_channel)
    spatial_size = (8, 8)
    N, H, W = 2, 16, 16

    x = jax.random.normal(kx, (N, in_channel_size[0], H, W), dtype=jnp.float32)
    params = make_params(in_channel_size, kw)

    fwd = jax.jit(functools.partial(adaptive_avg_pool_forward,
                                    params=params, spatial_size=spatial_size))
    out = fwd(x)
    jax.block_until_ready(out)

    assert out.shape == (N, in_channel_size[1], H, W), out.shape
    assert bool(jnp.all(out >= 0.0))  # ReLU then non-negative resize weights

    # bf16 im2col/weight inputs (f32 accumulation) -> loosened tolerance.
    ref = reference_forward(x, params, spatial_size)
    np.testing.assert_allclose(np.asarray(out), np.asarray(ref),
                               rtol=2e-2, atol=2e-2)

    print("KERNEL_OK")
</pallas_src>

<mosaic_0001>
module attributes {stable_mosaic.version = 11 : i64} {
  func.func @_fused_conv_bn_relu_resize_kernel(%arg0: i32, %arg1: i32, %arg2: memref<8x48xbf16, #tpu.memory_space<vmem>>, %arg3: memref<1x48x64xbf16, #tpu.memory_space<vmem>>, %arg4: memref<8x1xf32, #tpu.memory_space<vmem>>, %arg5: memref<64x256xf32, #tpu.memory_space<vmem>>, %arg6: memref<1x8x256xf32, #tpu.memory_space<vmem>>) attributes {dimension_semantics = [#tpu.dimension_semantics<parallel>, #tpu.dimension_semantics<parallel>], iteration_bounds = array<i64: 2, 1>, scalar_prefetch = 0 : i64, scratch_operands = 0 : i64, tpu.core_type = #tpu.core_type<tc>, window_params = [{pipeline_mode = #tpu.pipeline_mode<synchronous>, transform_indices = @transform_0, window_bounds = array<i64: 8, 48>}, {transform_indices = @transform_1, window_bounds = array<i64: 1, 48, 64>}, {pipeline_mode = #tpu.pipeline_mode<synchronous>, transform_indices = @transform_2, window_bounds = array<i64: 8, 1>}, {transform_indices = @transform_3, window_bounds = array<i64: 64, 256>}, {transform_indices = @transform_4, window_bounds = array<i64: 1, 8, 256>}]} {
    %c0 = arith.constant 0 : index
    %c0_0 = arith.constant 0 : index
    %0 = vector.load %arg2[%c0, %c0_0] : memref<8x48xbf16, #tpu.memory_space<vmem>>, vector<8x48xbf16>
    %c0_1 = arith.constant 0 : index
    %c0_2 = arith.constant 0 : index
    %c0_3 = arith.constant 0 : index
    %1 = vector.load %arg3[%c0_1, %c0_2, %c0_3] : memref<1x48x64xbf16, #tpu.memory_space<vmem>>, vector<1x48x64xbf16>
    %2 = vector.shape_cast %1 : vector<1x48x64xbf16> to vector<48x64xbf16>
    %cst = arith.constant dense<0.000000e+00> : vector<8x64xf32>
    %3 = tpu.matmul %0, %2, %cst {dimension_numbers = #tpu.dot_dimension_numbers<[1], [0], [0], [1], [0, 0, 1, 1], [], []>} : vector<8x48xbf16>, vector<48x64xbf16>, vector<8x64xf32> -> vector<8x64xf32>
    %c0_4 = arith.constant 0 : index
    %c0_5 = arith.constant 0 : index
    %4 = vector.load %arg4[%c0_4, %c0_5] : memref<8x1xf32, #tpu.memory_space<vmem>>, vector<8x1xf32>
    %5 = vector.broadcast %4 : vector<8x1xf32> to vector<8x64xf32>
    %6 = arith.addf %3, %5 : vector<8x64xf32>
    %cst_6 = arith.constant 0.000000e+00 : f32
    %7 = vector.broadcast %cst_6 : f32 to vector<8x64xf32>
    %8 = arith.maximumf %6, %7 : vector<8x64xf32>
    %c0_7 = arith.constant 0 : index
    %c0_8 = arith.constant 0 : index
    %9 = vector.load %arg5[%c0_7, %c0_8] : memref<64x256xf32, #tpu.memory_space<vmem>>, vector<64x256xf32>
    %cst_9 = arith.constant dense<0.000000e+00> : vector<8x256xf32>
    %10 = tpu.matmul %8, %9, %cst_9 {dimension_numbers = #tpu.dot_dimension_numbers<[1], [0], [0], [1], [0, 0, 1, 1], [], []>} : vector<8x64xf32>, vector<64x256xf32>, vector<8x256xf32> -> vector<8x256xf32>
    %c0_10 = arith.constant 0 : index
    %c0_11 = arith.constant 0 : index
    %c0_12 = arith.constant 0 : index
    %11 = vector.load %arg6[%c0_10, %c0_11, %c0_12] : memref<1x8x256xf32, #tpu.memory_space<vmem>>, vector<1x8x256xf32>
    %12 = vector.shape_cast %11 : vector<1x8x256xf32> to vector<8x256xf32>
    %13 = vector.shape_cast %10 : vector<8x256xf32> to vector<1x8x256xf32>
    tpu.vector_store %arg6[%c0_10, %c0_11, %c0_12], %13 {strides = array<i32>} : memref<1x8x256xf32, #tpu.memory_space<vmem>>, vector<1x8x256xf32>,
    return
  }
  func.func @transform_0(%arg0: i32, %arg1: i32) -> (i32, i32) {
    %c0_i32 = arith.constant 0 : i32
    %c0_i32_0 = arith.constant 0 : i32
    %c0_i32_1 = arith.constant 0 : i32
    return %c0_i32, %c0_i32_0 : i32, i32
  }
  func.func @transform_1(%arg0: i32, %arg1: i32) -> (i32, i32, i32) {
    %c0_i32 = arith.constant 0 : i32
    %c0_i32_0 = arith.constant 0 : i32
    %c0_i32_1 = arith.constant 0 : i32
    return %arg0, %c0_i32, %c0_i32_0 : i32, i32, i32
  }
  func.func @transform_2(%arg0: i32, %arg1: i32) -> (i32, i32) {
    %c0_i32 = arith.constant 0 : i32
    %c0_i32_0 = arith.constant 0 : i32
    %c0_i32_1 = arith.constant 0 : i32
    return %c0_i32, %c0_i32_0 : i32, i32
  }
  func.func @transform_3(%arg0: i32, %arg1: i32) -> (i32, i32) {
    %c0_i32 = arith.constant 0 : i32
    %c0_i32_0 = arith.constant 0 : i32
    return %c0_i32, %arg1 : i32, i32
  }
  func.func @transform_4(%arg0: i32, %arg1: i32) -> (i32, i32, i32) {
    %c0_i32 = arith.constant 0 : i32
    %c0_i32_0 = arith.constant 0 : i32
    return %arg0, %c0_i32, %arg1 : i32, i32, i32
  }
}

</mosaic_0001>

<bundles_post_ra>
// kernel: adaptive_avg_pool_forward.1
= control target key start
LH: loop header
LB: loop body
LE: loop exit
PB: predicated region body
PF: predicated region fallthrough
CT: control target
= control target key end

     0   :  { %s624_s15 = smov 0   ;;  %s626_s16 = smov 0   ;;  %s715_s0 = inlined_call_operand.vmem [shape: bf16[8,48], index: 0, kind: input, shape index: {}]   ;;  %s716_s1 = inlined_call_operand.vmem [shape: bf16[2,48,64], index: 1, kind: input, shape index: {}]   ;;  %s717_s2 = inlined_call_operand.vmem [shape: f32[8,1], index: 2, kind: input, shape index: {}]   ;;  %s718_s3 = inlined_call_operand.vmem [shape: f32[64,256], index: 3, kind: input, shape index: {}]   ;;  %s719_s4 = inlined_call_operand.vmem [shape: f32[2,8,256], index: 4, kind: output, shape index: {}]  }
   0x1   :  { %s628_s17 = smov 0  }
   0x2 LB: > { %s26_s18 = sadd.s32 1, %s590_s16  ;;  %p514_p0 = scmp.ge.s32.totalorder %s594_s17, 1  ;;  %s594_s17 = sphi %s628_s17, %s14_s17   ;;  %s590_s16 = sphi %s626_s16, %s721_s16   ;;  %s586_s15 = sphi %s624_s15, %s720_s15  }
   0x3   : > { %p28_p1 = scmp.ge.s32.totalorder %s26_s18, 2  ;;  %p187_p2 = scmp.lt.s32.totalorder %s594_s17, 3 }
   0x5   : > { %s723_s18 = smov (%p28_p1, %s26_s18), 0  ;;  %p188_p3 = pnand %p514_p0, %p187_p2 }
   0x6   : > { %p222_p4 = scmp.lt.s32.totalorder (!%p188_p3), %s586_s15, 1 }
   0x7   : > { %191 = sbr.rel (%p188_p3) target bundleno = 421 (0x1a5), region = 36 }
   0xc   : > { %v596_v0 = vmov 0.0   ;;  %vm597_vm0 = vmmov 0   ;;  %v251_v1 = vld [vmem:[%s717_s2] sm:$0xff]  ;;  %v335_v2 = vld [vmem:[%s718_s3 + $0x78] sm:$0xff]  ;;  %v334_v3 = vld [vmem:[%s718_s3 + $0x70] sm:$0xff]  ;;  %s725_s15 = smov (!%p222_p4, %s586_s15), 1 }
   0xd   : > { %530 = vmatprep.subr.bf16.mxu0 %v596_v0  ;;  %536 = vmatprep.mubr.msk.bf16.mxu0 %vm597_vm0, %v596_v0  ;;  %v598_v4 = vmov 0   ;;  %v333_v5 = vld [vmem:[%s718_s3 + $0x68] sm:$0xff]  ;;  %v332_v6 = vld [vmem:[%s718_s3 + $0x60] sm:$0xff]  ;;  %v331_v7 = vld [vmem:[%s718_s3 + $0x58] sm:$0xff]  ;;  %s540_s5 = smul.u32 24, %s725_s15  ;;  %vm275_vm1 = vcmask 392192  }
   0xe   : > { %568 = vset.pattern.permute.xlu0 %v598_v4  ;;  %356 = vmatprep.subr.mxu1 %v335_v2  ;;  %v330_v8 = vld [vmem:[%s718_s3 + $0x50] sm:$0xff]  ;;  %v329_v9 = vld [vmem:[%s718_s3 + $0x48] sm:$0xff]  ;;  %v328_v10 = vld [vmem:[%s718_s3 + $0x40] sm:$0xff]  ;;  %vm336_vm2 = vcmask 523264   ;;  %s525_s11 = sshll.u32 %s725_s15, 4 }
   0xf   : > { %254 = vperm.xlu0 %568, %v251_v1   ;;  %357 = vmatpush1.msra.mxu1 %v334_v3  ;;  %s226_s12 = scalar_lea.vmem %s716_s1, %s540_s5  ;;  %v327_v11 = vld [vmem:[%s718_s3 + $0x38] sm:$0xff]  ;;  %v326_v12 = vld [vmem:[%s718_s3 + $0x30] sm:$0xff]  ;;  %v325_v14 = vld [vmem:[%s718_s3 + $0x28] sm:$0xff]  ;;  %s241_s14 = scalar_lea.vmem %s719_s4, %s525_s11 }
  0x10   : > { %358 = vmatprep.subr.mxu1 %v333_v5  ;;  %404 = vmatprep.mubr.f32.mxu1 %v596_v0  ;;  %v569_v13 = vld [vmem:[%s226_s12 + $0x10] sm:$0xff]   ;;  %v570_v15 = vld [vmem:[%s226_s12 + $0x8] sm:$0xff]   ;;  %v324_v16 = vld [vmem:[%s718_s3 + $0x20] sm:$0xff] }
  0x11   : > { %359 = vmatpush1.msra.mxu1 %v332_v6  ;;  %531 = vmatpush3.bf16.msra.mxu0 %v569_v13  ;;  %v571_v17 = vld [vmem:[%s226_s12] sm:$0xff]   ;;  %v323_v19 = vld [vmem:[%s718_s3 + $0x18] sm:$0xff]  ;;  %v322_v20 = vld [vmem:[%s718_s3 + $0x10] sm:$0xff] }
  0x12   : > { %360 = vmatprep.subr.mxu1 %v331_v7  ;;  %532 = vmatprep.subr.bf16.mxu0 %v596_v0  ;;  %v244_v18 = vld [vmem:[%s715_s0] sm:$0xf]  ;;  %v321_v21 = vld [vmem:[%s718_s3 + $0x8] sm:$0xff] }
  0x13   : > { %361 = vmatpush1.msra.mxu1 %v330_v8  ;;  %v320_v22 = vld [vmem:[%s718_s3] sm:$0xff] }
  0x14   : > { %362 = vmatprep.subr.mxu1 %v329_v9 }
  0x15   : > { %363 = vmatpush1.msra.mxu1 %v328_v10  ;;  %533 = vmatpush3.bf16.msra.mxu0 %v570_v15 }
  0x16   : > { %364 = vmatprep.subr.mxu1 %v327_v11  ;;  %534 = vmatprep.subr.bf16.mxu0 %v596_v0 }
  0x17   : > { %365 = vmatpush1.msra.mxu1 %v326_v12 }
  0x18   : > { %366 = vmatprep.subr.mxu1 %v325_v14 }
  0x19   : > { %367 = vmatpush1.msra.mxu1 %v324_v16  ;;  %535 = vmatpush3.bf16.msra.mxu0 %v571_v17 }
  0x1a   : > { %368 = vmatprep.subr.mxu1 %v323_v19 }
  0x1b   : > { %369 = vmatpush1.msra.mxu1 %v322_v20 }
  0x1c   : > { %537 = vmatmul.mubr.msk.bf16.vlgmr.msra.gmra.mxu0 %vm275_vm1, %v244_v18  ;;  %370 = vmatprep.subr.mxu1 %v321_v21 }
  0x1d   : > { %371 = vmatpush1.msra.mxu1 %v320_v22 }
  0x8a   : > { %v255_v23 = vpop.permute.xlu0 %254 }
  0xdc   : > { %v313_v24 = vpop.f32.mrf.mxu0 }
  0xdd   : > { %v314_v25 = vadd.f32 %v313_v24, %v255_v23 }
  0xde   : > { %v538_v26 = vpop.f32.mrf.mxu0 }
  0xdf   : > { %v319_v27 = vmax.f32 %v314_v25, 0.0 }
  0xe0   : > { %v316_v28 = vpop.f32.mrf.mxu0 }
  0xe1   : > { %522 = vmatmul.mubr.msk.f32.vlgmr.msra.gmra.mxu1 %vm336_vm2, %v319_v27 }
  0xe2   : > { %v539_v29 = vpop.f32.mrf.mxu0 }
 0x1a1   : > { %v406_v30 = vpop.f32.mrf.mxu1 }
 0x1a2   : > { %411 = vst [vmem:[%s241_s14] sm:$0xff] %v406_v30 }
 0x1a3   : > { %v408_v31 = vpop.f32.mrf.mxu1 }
 0x1a4   : > { %412 = vst [vmem:[%s241_s14 + $0x8] sm:$0xff] %v408_v31 }
 0x1a5 PF: > { %s14_s17 = sadd.s32 1, %s594_s17   ;;  %s720_s15 = smov %s590_s16 }
 0x1a6   : > { %p11_p5 = scmp.ge.s32.totalorder %s14_s17, 4   ;;  %s721_s16 = smov %s723_s18 }
 0x1a8   :  { %13 = sbr.rel (!%p11_p5) target bundleno = 2 (0x2), region = 69 }

</bundles_post_ra>
